<compile_context>
chip_gen: v7x
topology: tpu7x:2x2x1
jax: 0.10.0
libtpu: 0.0.40
codegen_flags: <defaults>
</compile_context>

<pallas_src>
import functools

import jax
import jax.numpy as jnp
from jax import lax
from jax.experimental import pallas as pl
from jax.experimental.pallas import tpu as pltpu


# --------------------------------------------------------------------------- kernel
def _expand_kernel(x_ref, o_ref, *, s, W, TC, compute_dtype, precision):
    """Depth-to-space for one (n, channel-tile, row-tile) block.

    x_ref: (s*s, TC, TH, W)   source-channel taps feeding TC output channels
    o_ref: (TC, TH, s*s*W)    lane-dense output rows (s1-major, then w, then s2)
    """
    sW = s * W
    # Per-s2 0/1 spreading matrices: g[s2][w, j] = 1 iff j == w*s + s2.
    # Built once per grid step from iota (no DMA / no double-buffered constant) and
    # hoisted out of the loops below (JAX does not CSE broadcast/iota).
    w_ids = lax.broadcasted_iota(jnp.int32, (W, sW), 0)
    j_ids = lax.broadcasted_iota(jnp.int32, (W, sW), 1)
    g = [(j_ids == w_ids * s + s2).astype(compute_dtype) for s2 in range(s)]

    for c in range(TC):                       # static unroll; TC is kept small
        for s1 in range(s):
            acc = None
            for s2 in range(s):
                lhs = x_ref[s1 * s + s2, c]                     # (TH, W)
                if lhs.dtype != compute_dtype:
                    lhs = lhs.astype(compute_dtype)             # in-register only
                part = jnp.dot(lhs, g[s2],
                               precision=precision,
                               preferred_element_type=jnp.float32)
                acc = part if acc is None else acc + part
            # Exactly one non-zero contribution per output lane -> exact permutation.
            o_ref[c, :, s1 * sW:(s1 + 1) * sW] = acc.astype(o_ref.dtype)


# --------------------------------------------------------------------------- tiling
def _pick_tiles(N, Cp, H, W, s, itemsize):
    """Choose channel tile TC (divisor of Cp) and row tile TH under a VMEM budget."""
    sub = 8 if itemsize >= 4 else (16 if itemsize == 2 else 32)
    unit = 4 * s * s * W * itemsize           # dbl-buffered in+out bytes per (chan, row)
    budget = 24 << 20                         # conservative across v5e / v6e / v7x
    max_units = max(1, budget // unit)        # bound on TC * TH

    # Row tile: largest multiple-of-`sub` divisor of H, capped.
    th_cap = min(H, max_units, 512)
    TH = 0
    t = (th_cap // sub) * sub
    while t >= sub:
        if H % t == 0:
            TH = t
            break
        t -= sub
    if TH == 0:
        # Awkward H: full-H block only if it still fits; otherwise a capped tile with a
        # padded (masked) tail block via a cdiv grid (correct: pure permutation).
        TH = H if H <= th_cap else max(sub, (th_cap // sub) * sub)

    # Channel tile: largest divisor of Cp within budget (small cap bounds the unroll).
    tc_cap = max(1, min(8, max_units // max(TH, 1)))
    TC = 1
    for t in range(min(Cp, tc_cap), 0, -1):
        if Cp % t == 0:
            TC = t
            break

    # Keep >= 2 grid steps so v7x megacore can shard the work.
    steps = N * (Cp // TC) * pl.cdiv(H, TH)
    if steps < 2:
        if TH >= 2 * sub and H % (TH // 2) == 0:
            TH //= 2
        elif TC % 2 == 0:
            TC //= 2
    return TC, TH


# --------------------------------------------------------------------------- wrapper
def expand_pallas(x, gain=2):
    """Pallas TPU implementation of Expand(gain).forward for an NCHW input."""
    N, C, H, W = x.shape
    s = int(gain)
    assert C % (s * s) == 0, "C must be divisible by gain**2"
    Cp = C // (s * s)
    K = s * s * W
    dtype = x.dtype
    itemsize = jnp.dtype(dtype).itemsize

    # Native-dtype I/O; permutation matmul stays exact:
    #   bf16: single-pass bf16 x bf16 -> f32 against a 0/1 matrix.
    #   f32 : Precision.HIGHEST (exact).  Other floats: in-register upcast to f32.
    if dtype == jnp.bfloat16:
        compute_dtype, precision = jnp.bfloat16, lax.Precision.DEFAULT
    else:
        compute_dtype, precision = jnp.float32, lax.Precision.HIGHEST
    # TODO(synk): int32 inputs with |v| > 2^24 would lose bits in the f32 MXU path; an
    # integer-exact variant would need strided lane stores instead of the matmul.

    TC, TH = _pick_tiles(N, Cp, H, W, s, itemsize)

    # Free reshape (row-major split of C): (N, s*s, C', H, W); tap k = s1*s + s2.
    x5 = x.reshape(N, s * s, Cp, H, W)

    grid = (N, Cp // TC, pl.cdiv(H, TH))

    # Explicit VMEM budget (v5e scoped default is only 16 MiB; cap below v7x's 64 MiB).
    block_bytes = 2 * s * s * TC * TH * W * itemsize           # one input + one output block
    g_bytes = s * W * (s * W) * jnp.dtype(compute_dtype).itemsize
    vmem_limit = int(min(max(2 * block_bytes + g_bytes + (2 << 20), 16 << 20), 48 << 20))

    kernel = functools.partial(_expand_kernel, s=s, W=W, TC=TC,
                               compute_dtype=compute_dtype, precision=precision)

    out = pl.pallas_call(
        kernel,
        out_shape=jax.ShapeDtypeStruct((N, Cp, H, K), dtype),
        grid=grid,
        in_specs=[
            # All s^2 source channels feeding this channel-tile / row-tile.
            pl.BlockSpec((None, s * s, TC, TH, W), lambda n, c, h: (n, 0, c, h, 0)),
        ],
        out_specs=pl.BlockSpec((None, TC, TH, K), lambda n, c, h: (n, c, h, 0)),
        compiler_params=pltpu.CompilerParams(
            dimension_semantics=("parallel", "parallel", "parallel"),
            vmem_limit_bytes=vmem_limit),
        cost_estimate=pl.CostEstimate(
            flops=2 * N * Cp * H * s * s * W * (s * W),
            transcendentals=0,
            bytes_accessed=2 * N * C * H * W * itemsize),
    )(x5)

    # Free reshape (adjacent-dim merge): (N, C', H, s*(W*s)) -> (N, C', H*s, W*s).
    return out.reshape(N, Cp, H * s, W * s)


# --------------------------------------------------------------------------- reference
def expand_ref(x, gain=2):
    """Pure-JAX mirror of the PyTorch module: view -> permute -> view."""
    N, C, H, W = x.shape
    s = int(gain)
    x6 = x.reshape(N, s, s, C // (s * s), H, W)
    x6 = jnp.transpose(x6, (0, 3, 4, 1, 5, 2))
    return x6.reshape(N, C // (s * s), H * s, W * s)


# --------------------------------------------------------------------------- main
if __name__ == "__main__":
    key = jax.random.PRNGKey(0)
    k1, k2, k3 = jax.random.split(key, 3)

    # Small case consistent with the module (batch=2, channels=4, spatial=16).
    x_small = jax.random.normal(k1, (2, 4, 16, 16), jnp.float32)
    out_s = jax.block_until_ready(expand_pallas(x_small, gain=2))
    ref_s = expand_ref(x_small, gain=2)
    assert out_s.shape == (2, 1, 32, 32), out_s.shape
    assert jnp.allclose(out_s, ref_s, rtol=1e-6, atol=1e-6), float(jnp.max(jnp.abs(out_s - ref_s)))

    # Lane-dense case (s^2 * W = 128 output lanes), f32.
    x_main = jax.random.normal(k2, (2, 16, 32, 32), jnp.float32)
    out_m = jax.block_until_ready(expand_pallas(x_main, gain=2))
    ref_m = expand_ref(x_main, gain=2)
    assert out_m.shape == (2, 4, 64, 64), out_m.shape
    assert jnp.allclose(out_m, ref_m, rtol=1e-6, atol=1e-6), float(jnp.max(jnp.abs(out_m - ref_m)))

    # Native-dtype path: bf16 in -> bf16 out, no f32 HBM round trip, exact result.
    x_bf16 = jax.random.normal(k3, (2, 16, 32, 32), jnp.float32).astype(jnp.bfloat16)
    out_b = jax.block_until_ready(expand_pallas(x_bf16, gain=2))
    ref_b = expand_ref(x_bf16, gain=2)
    assert out_b.dtype == jnp.bfloat16, out_b.dtype
    assert jnp.array_equal(out_b, ref_b)

    print("KERNEL_OK")
</pallas_src>

<mosaic_0001>
module attributes {stable_mosaic.version = 11 : i64} {
  func.func @_expand_kernel(%arg0: i32, %arg1: i32, %arg2: i32, %arg3: memref<1x4x1x16x16xf32, #tpu.memory_space<vmem>>, %arg4: memref<1x1x16x64xf32, #tpu.memory_space<vmem>>) attributes {dimension_semantics = [#tpu.dimension_semantics<parallel>, #tpu.dimension_semantics<parallel>, #tpu.dimension_semantics<parallel>], iteration_bounds = array<i64: 2, 1, 1>, scalar_prefetch = 0 : i64, scratch_operands = 0 : i64, tpu.core_type = #tpu.core_type<tc>, window_params = [{transform_indices = @transform_0, window_bounds = array<i64: 1, 4, 1, 16, 16>}, {transform_indices = @transform_1, window_bounds = array<i64: 1, 1, 16, 64>}]} {
    %0 = tpu.iota {dimensions = array<i32: 0>} : vector<16x32xi32>
    %1 = tpu.iota {dimensions = array<i32: 1>} : vector<16x32xi32>
    %c2_i32 = arith.constant 2 : i32
    %2 = vector.broadcast %c2_i32 : i32 to vector<16x32xi32>
    %3 = arith.muli %0, %2 : vector<16x32xi32>
    %c0_i32 = arith.constant 0 : i32
    %4 = vector.broadcast %c0_i32 : i32 to vector<16x32xi32>
    %5 = arith.addi %3, %4 : vector<16x32xi32>
    %6 = arith.cmpi eq, %1, %5 : vector<16x32xi32>
    %7 = arith.extui %6 : vector<16x32xi1> to vector<16x32xi32>
    %8 = arith.sitofp %7 : vector<16x32xi32> to vector<16x32xf32>
    %c2_i32_0 = arith.constant 2 : i32
    %9 = vector.broadcast %c2_i32_0 : i32 to vector<16x32xi32>
    %10 = arith.muli %0, %9 : vector<16x32xi32>
    %c1_i32 = arith.constant 1 : i32
    %11 = vector.broadcast %c1_i32 : i32 to vector<16x32xi32>
    %12 = arith.addi %10, %11 : vector<16x32xi32>
    %13 = arith.cmpi eq, %1, %12 : vector<16x32xi32>
    %14 = arith.extui %13 : vector<16x32xi1> to vector<16x32xi32>
    %15 = arith.sitofp %14 : vector<16x32xi32> to vector<16x32xf32>
    %c0 = arith.constant 0 : index
    %c0_1 = arith.constant 0 : index
    %c0_2 = arith.constant 0 : index
    %c0_3 = arith.constant 0 : index
    %c0_4 = arith.constant 0 : index
    %16 = vector.load %arg3[%c0, %c0_1, %c0_2, %c0_3, %c0_4] : memref<1x4x1x16x16xf32, #tpu.memory_space<vmem>>, vector<1x1x1x16x16xf32>
    %17 = vector.shape_cast %16 : vector<1x1x1x16x16xf32> to vector<16x16xf32>
    %cst = arith.constant dense<0.000000e+00> : vector<16x32xf32>
    %18 = tpu.matmul %17, %8, %cst {dimension_numbers = #tpu.dot_dimension_numbers<[1], [0], [0], [1], [0, 0, 1, 1], [], []>, precision = #tpu.contract_precision<fp32>} : vector<16x16xf32>, vector<16x32xf32>, vector<16x32xf32> -> vector<16x32xf32>
    %c0_5 = arith.constant 0 : index
    %c1 = arith.constant 1 : index
    %c0_6 = arith.constant 0 : index
    %c0_7 = arith.constant 0 : index
    %c0_8 = arith.constant 0 : index
    %19 = vector.load %arg3[%c0_5, %c1, %c0_6, %c0_7, %c0_8] : memref<1x4x1x16x16xf32, #tpu.memory_space<vmem>>, vector<1x1x1x16x16xf32>
    %20 = vector.shape_cast %19 : vector<1x1x1x16x16xf32> to vector<16x16xf32>
    %cst_9 = arith.constant dense<0.000000e+00> : vector<16x32xf32>
    %21 = tpu.matmul %20, %15, %cst_9 {dimension_numbers = #tpu.dot_dimension_numbers<[1], [0], [0], [1], [0, 0, 1, 1], [], []>, precision = #tpu.contract_precision<fp32>} : vector<16x16xf32>, vector<16x32xf32>, vector<16x32xf32> -> vector<16x32xf32>
    %22 = arith.addf %18, %21 : vector<16x32xf32>
    %c0_10 = arith.constant 0 : index
    %c0_11 = arith.constant 0 : index
    %c0_12 = arith.constant 0 : index
    %c0_13 = arith.constant 0 : index
    %23 = vector.load %arg4[%c0_10, %c0_11, %c0_12, %c0_13] : memref<1x1x16x64xf32, #tpu.memory_space<vmem>>, vector<1x1x16x32xf32>
    %24 = vector.shape_cast %23 : vector<1x1x16x32xf32> to vector<16x32xf32>
    %25 = vector.shape_cast %22 : vector<16x32xf32> to vector<1x1x16x32xf32>
    tpu.vector_store %arg4[%c0_10, %c0_11, %c0_12, %c0_13], %25 {strides = array<i32>} : memref<1x1x16x64xf32, #tpu.memory_space<vmem>>, vector<1x1x16x32xf32>,
    %c0_14 = arith.constant 0 : index
    %c2 = arith.constant 2 : index
    %c0_15 = arith.constant 0 : index
    %c0_16 = arith.constant 0 : index
    %c0_17 = arith.constant 0 : index
    %26 = vector.load %arg3[%c0_14, %c2, %c0_15, %c0_16, %c0_17] : memref<1x4x1x16x16xf32, #tpu.memory_space<vmem>>, vector<1x1x1x16x16xf32>
    %27 = vector.shape_cast %26 : vector<1x1x1x16x16xf32> to vector<16x16xf32>
    %cst_18 = arith.constant dense<0.000000e+00> : vector<16x32xf32>
    %28 = tpu.matmul %27, %8, %cst_18 {dimension_numbers = #tpu.dot_dimension_numbers<[1], [0], [0], [1], [0, 0, 1, 1], [], []>, precision = #tpu.contract_precision<fp32>} : vector<16x16xf32>, vector<16x32xf32>, vector<16x32xf32> -> vector<16x32xf32>
    %c0_19 = arith.constant 0 : index
    %c3 = arith.constant 3 : index
    %c0_20 = arith.constant 0 : index
    %c0_21 = arith.constant 0 : index
    %c0_22 = arith.constant 0 : index
    %29 = vector.load %arg3[%c0_19, %c3, %c0_20, %c0_21, %c0_22] : memref<1x4x1x16x16xf32, #tpu.memory_space<vmem>>, vector<1x1x1x16x16xf32>
    %30 = vector.shape_cast %29 : vector<1x1x1x16x16xf32> to vector<16x16xf32>
    %cst_23 = arith.constant dense<0.000000e+00> : vector<16x32xf32>
    %31 = tpu.matmul %30, %15, %cst_23 {dimension_numbers = #tpu.dot_dimension_numbers<[1], [0], [0], [1], [0, 0, 1, 1], [], []>, precision = #tpu.contract_precision<fp32>} : vector<16x16xf32>, vector<16x32xf32>, vector<16x32xf32> -> vector<16x32xf32>
    %32 = arith.addf %28, %31 : vector<16x32xf32>
    %c0_24 = arith.constant 0 : index
    %c0_25 = arith.constant 0 : index
    %c0_26 = arith.constant 0 : index
    %c32 = arith.constant 32 : index
    %33 = vector.load %arg4[%c0_24, %c0_25, %c0_26, %c32] : memref<1x1x16x64xf32, #tpu.memory_space<vmem>>, vector<1x1x16x32xf32>
    %34 = vector.shape_cast %33 : vector<1x1x16x32xf32> to vector<16x32xf32>
    %35 = vector.shape_cast %32 : vector<16x32xf32> to vector<1x1x16x32xf32>
    tpu.vector_store %arg4[%c0_24, %c0_25, %c0_26, %c32], %35 {strides = array<i32>} : memref<1x1x16x64xf32, #tpu.memory_space<vmem>>, vector<1x1x16x32xf32>,
    return
  }
  func.func @transform_0(%arg0: i32, %arg1: i32, %arg2: i32) -> (i32, i32, i32, i32, i32) {
    %c0_i32 = arith.constant 0 : i32
    %c0_i32_0 = arith.constant 0 : i32
    %c0_i32_1 = arith.constant 0 : i32
    return %arg0, %c0_i32, %arg1, %arg2, %c0_i32_0 : i32, i32, i32, i32, i32
  }
  func.func @transform_1(%arg0: i32, %arg1: i32, %arg2: i32) -> (i32, i32, i32, i32) {
    %c0_i32 = arith.constant 0 : i32
    %c0_i32_0 = arith.constant 0 : i32
    return %arg0, %arg1, %arg2, %c0_i32 : i32, i32, i32, i32
  }
}

</mosaic_0001>

<bundles_post_ra>
// kernel: tpu_custom_call.1
= control target key start
LH: loop header
LB: loop body
LE: loop exit
PB: predicated region body
PF: predicated region fallthrough
CT: control target
= control target key end

     0   :  { %6 = vsyncpa [#allocation3], 0  ;;  %s3413_s0 = inlined_call_operand.hbm [shape: f32[2,4,1,16,16], index: 0, kind: input, shape index: {}]   ;;  %s3414_s1 = inlined_call_operand.hbm [shape: f32[2,1,16,64], index: 1, kind: output, shape index: {}]  }
   0x1   :  { %8 = vsyncpa [#allocation3 + $0x1], 0 }
   0x2   :  { %9 = vsyncpa [#allocation4], 0 }
   0x3   :  { %11 = vsyncpa [#allocation4 + $0x1], 0  ;;  %s3016_s6 = smov 0   ;;  %s3018_s7 = smov 0  }
   0x4   :  { %s3020_s8 = smov 0   ;;  %s3022_s9 = smov 0  }
   0x5   :  { %s3024_s10 = smov 0   ;;  %s3026_s11 = smov 0  }
   0x6 LB: > { %s2359_s12 = sadd.s32 4294967295, %s2995_s11   ;;  %s2360_s13 = sadd.s32 4294967294, %s2995_s11   ;;  %s2995_s11 = sphi %s3026_s11, %s17_s11   ;;  %s2991_s10 = sphi %s3024_s10, %s3437_s10   ;;  %s2987_s9 = sphi %s3022_s9, %s3436_s9   ;;  %s2983_s8 = sphi %s3020_s8, %s3435_s8   ;;  %s2979_s7 = sphi %s3018_s7, %s3434_s7   ;;  %s2975_s6 = sphi %s3016_s6, %s3433_s6  }
   0x7   : > { %s36_s14 = sadd.s32 1, %s2991_s10  ;;  %s47_s15 = sadd.s32 1, %s2983_s8 }
   0x8   : > { %p38_p0 = scmp.ge.s32.totalorder %s36_s14, 2  ;;  %p54_p1 = scmp.ne.s32.totalorder %s2983_s8, %s2979_s7 }
   0x9   : > { %p55_p2 = scmp.eq.s32.totalorder %s2995_s11, 0  ;;  %p60_p3 = scmp.ne.s32.totalorder %s2979_s7, %s2975_s6 }
   0xa   : > { %s3439_s14 = smov (%p38_p0, %s36_s14), 0  ;;  %p61_p5 = scmp.eq.s32.totalorder %s2359_s12, 0 }
   0xb   : > { %p3057_p4 = por %p55_p2, %p54_p1  ;;  %s40_s17 = ssub.s32 %s2991_s10, %s3439_s14 }
   0xc   : > { %p88_p6 = scmp.eq.s32.totalorder %s2359_s12, 1  ;;  %p45_p7 = scmp.eq.s32.totalorder %s40_s17, 0 }
   0xd   : > { %p3063_p8 = por %p61_p5, %p60_p3  ;;  %p94_p10 = scmp.eq.s32.totalorder %s2360_s13, 1 }
   0xe   : > { %p3067_p9 = por %p88_p6, %p54_p1  ;;  %p2826_p13 = scmp.lt.s32.totalorder %s2995_s11, 2 }
   0xf   : > { %s3072_s20 = scalar_select %p45_p7, %s2983_s8, %s47_s15  }
  0x10   : > { %s3418_s19 = scalar_select %p3067_p9, 1, 0 }
  0x11   : > { %p3074_p11 = por %p94_p10, %p60_p3  ;;  %s114_s22 = sand.u32 1, %s2983_s8  }
  0x12   : > { %s2363_s23 = sshll.u32 %s114_s22, 6  ;;  %s2408_s24 = sshll.u32 %s2991_s10, 10 }
  0x13   : > { %s3419_s21 = scalar_select %p3074_p11, 1, 0 }
  0x14   : > { %s3085_s27 = scalar_lea.hbm %s3413_s0, %s2408_s24  ;;  %s118_s28 = scalar_lea.vmem [#allocation2], %s2363_s23 }
  0x15   : > { %s129_s29 = sshll.u32 %s118_s28, 4  ;;  %p3091_p0 = pnand %p2826_p13, %p3057_p4  ;;  %s3087_s29 = int_to_ptr.vmem [resolvable:$true] %s129_s29 }
  0x16   : > { %s3096_s2 = scalar_lea.sflag [#allocation3], %s114_s22  ;;  %s2883_s3 = scalar_lea.hbm %s3085_s27, 1024 }
  0x17   : > { %p2884_p2 = scmp.ne.s32.totalorder %s3085_s27, %s2883_s3  ;;  %p2885_p3 = pneg %p3091_p0 }
  0x18   : > { %s2888_s12 = scalar_lea.hbm %s3413_s0, 2048  ;;  %p2889_p4 = scmp.lt.u32.totalorder %s3085_s27, %s3413_s0 }
  0x19   : > { %p2886_p5 = pnand %p2885_p3, %p2884_p2  ;;  %p2890_p7 = scmp.lt.u32.totalorder %s2888_s12, %s2883_s3 }
  0x1a   : > { %p2892_p13 = scmp.lt.u32.totalorder %s2883_s3, %s3085_s27 }
  0x1b   : > { %p2887_p6 = pneg %p2886_p5  ;;  %p2891_p10 = por %p2890_p7, %p2889_p4 }
  0x1d   : > { %p2893_p12 = por %p2892_p13, %p2891_p10 }
  0x1f   : > { %p2894_p1 = pnand %p2893_p12, %p2887_p6 }
  0x21   : > { %2897 = shalt.err (!%p2894_p1)
}
  0x22   : > { %s2898_s16 = scalar_lea.vmem %s3087_s29, 1024  ;;  %s2997_s17 = smov [#allocation2]  }
  0x23   : > { %p2899_p2 = scmp.ne.s32.totalorder %s3087_s29, %s2898_s16  ;;  %s2903_s22 = sshll.u32 %s2997_s17, 4  ;;  %s2904_s22 = int_to_ptr.vmem [resolvable:$false] %s2903_s22 }
  0x24   : > { %s2905_s23 = scalar_lea.vmem %s2904_s22, 2048  ;;  %p2906_p9 = scmp.lt.s32.totalorder %s3087_s29, %s2904_s22 }
  0x25   : > { %p2901_p5 = pnand %p2899_p2, %p2885_p3  ;;  %p2907_p4 = scmp.lt.s32.totalorder %s2905_s23, %s2898_s16 }
  0x27   : > { %p2902_p11 = pneg %p2901_p5  ;;  %p2908_p7 = por %p2907_p4, %p2906_p9 }
  0x29   : > { %p2909_p10 = pnand %p2908_p7, %p2902_p11 }
  0x2b   : > { %2912 = shalt.err (!%p2909_p10)
}
  0x2c   : > { %s2998_s24 = smov 128   ;;  %s2999_s25 = smov 8  }
  0x2d   : > { %2821 = dma.hbm_to_vmem [thread:$0]  (!%p3091_p0), %s3085_s27, 1024, %s3087_s29, %s3096_s2, %s2998_s24, %s2998_s24, %s2999_s25  }
  0x2e   : > { %p137_p12 = scmp.lt.s32.totalorder %s2995_s11, 3  ;;  %p3421_p1 = scmp.ge.s32.totalorder %s2995_s11, 1 }
  0x30   : > { %p138_p3 = pnand %p3421_p1, %p137_p12 }
  0x31   : > { %s3128_s26 = sand.u32 (!%p138_p3), 1, %s2979_s7  }
  0x32   : > { %141 = sbr.rel (%p138_p3) target bundleno = 511 (0x1ff), region = 24  ;;  %s2367_s28 = sshll.u32 (!%p138_p3), %s3128_s26, 6 }
  0x33   : > { %s144_s3 = scalar_lea.sflag (!%p138_p3), [#allocation3], %s3128_s26  ;;  %s3132_s4 = scalar_lea.vmem (!%p138_p3), [#allocation2], %s2367_s28 }
  0x39   : > { %2966 = dma.done.wait (%p3063_p8), %s144_s3, 1024  }
  0x3a   : > { %2968 = vsyncadd (%p3063_p8), %s144_s3, 4294966272  ;;  %v168_v0 = vlaneseq  ;;  %vm194_vm0 = vcmask 130048   ;;  %v2389_v7 = vld [vmem:[%s3132_s4 + $0x30] sm:$0xff]  ;;  %v2390_v8 = vld [vmem:[%s3132_s4 + $0x38] sm:$0xff]  ;;  %v3000_v16 = vmov 0.0   ;;  %s2368_s18 = sshll.u32 %s3128_s26, 4 }
  0x3b   : > { %v2373_v9 = vld [vmem:[%s3132_s4 + $0x10] sm:$0xff]  ;;  %v1221_v11 = vsel %vm194_vm0, %v2389_v7, 0  ;;  %v1224_v12 = vsel %vm194_vm0, %v2390_v8, 0  ;;  %v2374_v13 = vld [vmem:[%s3132_s4 + $0x18] sm:$0xff]  ;;  %v3001_v27 = vmov 1.0|1.0  }
  0x3c   : > { %v3138_v1 = vshrl.u32 %v168_v0, 7  ;;  %v3143_v3 = vand.u32 127, %v168_v0  ;;  %v3158_v14 = vand.u32 4294901760, %v1221_v11  ;;  %v3160_v15 = vand.u32 4294901760, %v1224_v12  ;;  %v2387_v52 = vld [vmem:[%s3132_s4 + $0x20] sm:$0xff]  ;;  %v2388_v61 = vld [vmem:[%s3132_s4 + $0x28] sm:$0xff] }
  0x3d   : > { %v196_v18 = vsel %vm194_vm0, %v2373_v9, 0  ;;  %v199_v21 = vsel %vm194_vm0, %v2374_v13, 0  ;;  %v189_v55 = vld [vmem:[%s3132_s4] sm:$0xff]  ;;  %v1729_v56 = vsel %vm194_vm0, %v2387_v52, 0  ;;  %vm1211_vm7 = vcmask 261120   ;;  %s3002_s27 = smov 32  }
  0x3e   : > { %v3141_v2 = vadd.s32 8, %v3138_v1  ;;  %v173_v4 = vmul.u32 2, %v3138_v1  ;;  %v3165_v20 = vand.u32 4294901760, %v196_v18  ;;  %v1294_v23 = vsub.f32 %v1221_v11, %v3158_v14  ;;  %v190_v1 = vld [vmem:[%s3132_s4 + $0x8] sm:$0xff]  ;;  %s165_s29 = scalar_lea.vmem [#allocation5], %s2368_s18  ;;  %s2409_s30 = sshll.u32 %s2987_s9, 8 }
  0x3f   : > { %v3174_v24 = vsub.f32 %v1224_v12, %v3160_v15  ;;  %v3177_v26 = vand.u32 4294901760, %v199_v21  ;;  %v704_v59 = vsel %vm194_vm0, %v189_v55, 0  ;;  %v3241_v60 = vand.u32 4294901760, %v1729_v56  ;;  %s2265_s2 = sshll.u32 %s165_s29, 4  ;;  %s3362_s13 = scalar_lea.hbm %s3414_s1, %s2409_s30  ;;  %s3364_s2 = int_to_ptr.vmem [resolvable:$true] %s2265_s2 }
  0x40   : > { %v174_v5 = vmul.u32 2, %v3141_v2  ;;  %v181_v6 = vadd.s32 1, %v173_v4  ;;  %v269_v30 = vsub.f32 %v196_v18, %v3165_v20  ;;  %v1295_v31 = vand.u32 4294901760, %v1294_v23  ;;  %s2248_s15 = scalar_lea.sflag [#allocation4], %s3128_s26  ;;  %s2913_s16 = scalar_lea.vmem %s3364_s2, 256 }
  0x41   : > { %v1305_v32 = vand.u32 4294901760, %v3174_v24  ;;  %v3194_v33 = vsub.f32 %v199_v21, %v3177_v26  ;;  %vm3214_vm4 = vcmp.eq.s32.totalorder %v3143_v3, %v173_v4  ;;  %v3248_v0 = vand.u32 4294901760, %v704_v59  ;;  %p2914_p8 = scmp.ne.s32.totalorder %s3364_s2, %s2913_s16  ;;  %p3430_p9 = scmp.ne.s32.totalorder %s3418_s19, 0 }
  0x42   : > { %v182_v10 = vadd.s32 1, %v174_v5  ;;  %vm183_vm1 = vcmp.eq.s32.totalorder %v3143_v3, %v181_v6  ;;  %v270_v36 = vand.u32 4294901760, %v269_v30  ;;  %v1296_v37 = vsub.f32 %v1294_v23, %v1295_v31  ;;  %s3003_s9 = smov [#allocation5]  }
  0x43   : > { %v2371_v17 = vsel %vm183_vm1, 1.0, %v3000_v16  ;;  %v1306_v38 = vsub.f32 %v3174_v24, %v1305_v32  ;;  %v280_v39 = vand.u32 4294901760, %v3194_v33  ;;  %vm3221_vm5 = vcmp.eq.s32.totalorder %v3143_v3, %v174_v5  ;;  %p2915_p11 = pnand %p2914_p8, %p3430_p9  ;;  %s2917_s17 = sshll.u32 %s3003_s9, 4  ;;  %s2918_s17 = int_to_ptr.vmem [resolvable:$false] %s2917_s17 }
  0x44   : > { %vm184_vm2 = vcmp.eq.s32.totalorder %v3143_v3, %v182_v10  ;;  %v290_v19 = vsub.f32 %v2371_v17, %v2371_v17  ;;  %v271_v42 = vsub.f32 %v269_v30, %v270_v36  ;;  %v1297_v43 = vand.u32 4294901760, %v1296_v37  ;;  %vm3282_vm6 = vmpackc.low %vm3221_vm5, %vm3214_vm4  ;;  %s2919_s22 = scalar_lea.vmem %s2918_s17, 512  ;;  %p2920_p6 = scmp.lt.s32.totalorder %s3364_s2, %s2918_s17 }
  0x45   : > { %vm3168_vm3 = vmpackc.low %vm184_vm2, %vm183_vm1  ;;  %v2372_v25 = vsel %vm184_vm2, 1.0, %v3000_v16  ;;  %v1307_v44 = vand.u32 4294901760, %v1306_v38  ;;  %v281_v45 = vsub.f32 %v3194_v33, %v280_v39  ;;  %v2369_v57 = vsel %vm3214_vm4, 1.0, %v3000_v16  ;;  %p2916_p0 = pneg %p2915_p11  ;;  %p2921_p13 = scmp.lt.s32.totalorder %s2919_s22, %s2913_s16 }
  0x46   : > { %2723 = vmatprep.subr.msk.bf16.mxu1 %vm3168_vm3, %v3001_v27  ;;  %v291_v28 = vand.u32 4294901760, %v290_v19  ;;  %v297_v29 = vsub.f32 %v2372_v25, %v2372_v25  ;;  %2675 = vmatprep.subr.msk.bf16.mxu0 %vm3168_vm3, %v3001_v27  ;;  %v272_v47 = vand.u32 4294901760, %v271_v42  ;;  %v2370_v58 = vsel %vm3221_vm5, 1.0, %v3000_v16 }
  0x47   : > { %2725 = vmatpush3.bf16.msk.msra.mxu1 %vm3168_vm3, %v3001_v27  ;;  %2677 = vmatpush3.bf16.msk.msra.mxu0 %vm3168_vm3, %v3001_v27  ;;  %v282_v48 = vand.u32 4294901760, %v281_v45  ;;  %v3244_v62 = vsub.f32 %v2369_v57, %v2369_v57  ;;  %v3246_v63 = vsub.f32 %v2370_v58, %v2370_v58  ;;  %v3253_v2 = vsub.f32 %v1729_v56, %v3241_v60  ;;  %p2922_p2 = por %p2921_p13, %p2920_p6 }
  0x48   : > { %v292_v34 = vsub.f32 %v290_v19, %v291_v28  ;;  %v298_v35 = vand.u32 4294901760, %v297_v29  ;;  %2594 = vmatprep.mubr.f32.mxu1 %v1297_v43  ;;  %v2682_v50 = vpack.c.bf16 %v297_v29, %v290_v19  ;;  %2510 = vmatprep.mubr.f32.mxu0 %v272_v47  ;;  %v1732_v3 = vsel %vm194_vm0, %v2388_v61, 0 }
  0x49   : > { %v799_v4 = vand.u32 4294901760, %v3244_v62  ;;  %v806_v5 = vand.u32 4294901760, %v3246_v63  ;;  %v3263_v6 = vsub.f32 %v704_v59, %v3248_v0  ;;  %v707_v7 = vsel %vm194_vm0, %v190_v1, 0  ;;  %p2923_p5 = pnand %p2922_p2, %p2916_p0 }
  0x4a   : > { %v293_v40 = vand.u32 4294901760, %v292_v34  ;;  %v299_v41 = vsub.f32 %v297_v29, %v298_v35  ;;  %2595 = vmatmul.mubr.f32.vlgmr.msra.gmra.mrb[0].mxu1 %v1307_v44  ;;  %2511 = vmatmul.mubr.f32.vlgmr.msra.gmra.mrb[0].mxu0 %v282_v48  ;;  %v2690_v51 = vpack.c.bf16 %v298_v35, %v291_v28  ;;  %v3266_v8 = vand.u32 4294901760, %v1732_v3 }
  0x4b   : > { %2601 = vmatprep.mubr.f32.mxu1 %v3158_v14  ;;  %2517 = vmatprep.mubr.f32.mxu0 %v3165_v20  ;;  %v1803_v9 = vand.u32 4294901760, %v3253_v2  ;;  %v800_v10 = vsub.f32 %v3244_v62, %v799_v4  ;;  %v807_v11 = vsub.f32 %v3246_v63, %v806_v5  ;;  %v3276_v12 = vand.u32 4294901760, %v707_v7 }
  0x4c   : > { %v300_v46 = vand.u32 4294901760, %v299_v41  ;;  %v778_v16 = vand.u32 4294901760, %v3263_v6  ;;  %v1812_v17 = vsub.f32 %v1732_v3, %v3266_v8  ;;  %vm2244_vm8 = vcmask 523520  }
  0x4d   : > { %v1804_v18 = vsub.f32 %v3253_v2, %v1803_v9  ;;  %v801_v19 = vand.u32 4294901760, %v800_v10  ;;  %v808_v21 = vand.u32 4294901760, %v807_v11 }
  0x4e   : > { %v2678_v49 = vpack.c.bf16 %v300_v46, %v293_v40 }
  0x4f   : > { %v1805_v25 = vand.u32 4294901760, %v1804_v18  ;;  %v2702_v28 = vpack.c.bf16 %v808_v21, %v801_v19 }
  0x50   : > { %2727 = vmatprep.subr.bf16.mxu1 %v2678_v49  ;;  %2679 = vmatprep.subr.bf16.mxu0 %v2678_v49 }
  0x51   : > { %2729 = vmatpush3.bf16.msra.mxu1 %v2678_v49  ;;  %2681 = vmatpush3.bf16.msra.mxu0 %v2678_v49 }
  0x52   : > { %2731 = vmatprep.subr.bf16.mxu1 %v2682_v50  ;;  %2683 = vmatprep.subr.bf16.mxu0 %v2682_v50 }
  0x54   : > { %2602 = vmatmul.mubr.f32.vlgmr.msra.gmra.mrb[0].mxu1 %v3160_v15  ;;  %2518 = vmatmul.mubr.f32.vlgmr.msra.gmra.mrb[0].mxu0 %v3177_v26 }
  0x55   : > { %2733 = vmatpush3.bf16.msra.mxu1 %v2682_v50  ;;  %2608 = vmatprep.mubr.f32.mxu1 %v1294_v23  ;;  %v787_v23 = vsub.f32 %v707_v7, %v3276_v12 }
  0x56   : > { %2735 = vmatprep.subr.msk.bf16.mxu1 %vm3168_vm3, %v3001_v27  ;;  %2685 = vmatpush3.bf16.msra.mxu0 %v2682_v50 }
  0x57   : > { %2524 = vmatprep.mubr.f32.mxu0 %v269_v30  ;;  %2687 = vmatprep.subr.msk.bf16.mxu0 %vm3168_vm3, %v3001_v27  ;;  %v788_v29 = vand.u32 4294901760, %v787_v23 }
  0x5c   : > { %2609 = vmatmul.mubr.f32.vlgmr.msra.gmra.mrb[0].mxu1 %v3174_v24  ;;  %2525 = vmatmul.mubr.f32.vlgmr.msra.gmra.mrb[0].mxu0 %v3194_v33  ;;  %v1813_v24 = vand.u32 4294901760, %v1812_v17 }
  0x5d   : > { %2737 = vmatpush3.bf16.msk.msra.mxu1 %vm3168_vm3, %v3001_v27  ;;  %2615 = vmatprep.mubr.f32.mxu1 %v1295_v31 }
  0x5e   : > { %2739 = vmatprep.subr.bf16.mxu1 %v2690_v51  ;;  %2689 = vmatpush3.bf16.msk.msra.mxu0 %vm3168_vm3, %v3001_v27  ;;  %v1814_v31 = vsub.f32 %v1812_v17, %v1813_v24 }
  0x5f   : > { %2531 = vmatprep.mubr.f32.mxu0 %v270_v36  ;;  %2691 = vmatprep.subr.bf16.mxu0 %v2690_v51 }
  0x60   : > { %v1815_v22 = vand.u32 4294901760, %v1814_v31 }
  0x64   : > { %2616 = vmatmul.mubr.f32.vlgmr.msra.gmra.mrb[0].mxu1 %v1305_v32  ;;  %2532 = vmatmul.mubr.f32.vlgmr.msra.gmra.mrb[0].mxu0 %v280_v39 }
  0x65   : > { %2741 = vmatpush3.bf16.msra.mxu1 %v2690_v51  ;;  %2622 = vmatprep.mubr.f32.mxu1 %v3158_v14 }
  0x66   : > { %2743 = vmatprep.subr.msk.bf16.mxu1 %vm3168_vm3, %v3001_v27  ;;  %2693 = vmatpush3.bf16.msra.mxu0 %v2690_v51 }
  0x67   : > { %2538 = vmatprep.mubr.f32.mxu0 %v3165_v20  ;;  %2695 = vmatprep.subr.msk.bf16.mxu0 %vm3168_vm3, %v3001_v27 }
  0x6c   : > { %2623 = vmatmul.mubr.f32.vlgmr.msra.gmra.mrb[0].mxu1 %v3160_v15  ;;  %2539 = vmatmul.mubr.f32.vlgmr.msra.gmra.mrb[0].mxu0 %v3177_v26 }
  0x6d   : > { %2745 = vmatpush3.bf16.msk.msra.mxu1 %vm3168_vm3, %v3001_v27  ;;  %2629 = vmatprep.mubr.f32.mxu1 %v3158_v14  ;;  %v779_v14 = vsub.f32 %v3263_v6, %v778_v16 }
  0x6e   : > { %2747 = vmatprep.subr.msk.bf16.mxu1 %vm3282_vm6, %v3001_v27  ;;  %2697 = vmatpush3.bf16.msk.msra.mxu0 %vm3168_vm3, %v3001_v27 }
  0x6f   : > { %2545 = vmatprep.mubr.f32.mxu0 %v3165_v20  ;;  %2699 = vmatprep.subr.msk.bf16.mxu0 %vm3282_vm6, %v3001_v27  ;;  %v780_v30 = vand.u32 4294901760, %v779_v14  ;;  %v789_v20 = vsub.f32 %v787_v23, %v788_v29 }
  0x71   : > { %v790_v32 = vand.u32 4294901760, %v789_v20 }
  0x74   : > { %2630 = vmatmul.mubr.f32.vlgmr.msra.gmra.mrb[0].mxu1 %v3160_v15  ;;  %2546 = vmatmul.mubr.f32.vlgmr.msra.gmra.mrb[0].mxu0 %v3177_v26  ;;  %v2706_v15 = vpack.c.bf16 %v3246_v63, %v3244_v62  ;;  %v2714_v26 = vpack.c.bf16 %v806_v5, %v799_v4 }
  0x75   : > { %2749 = vmatpush3.bf16.msk.msra.mxu1 %vm3282_vm6, %v3001_v27  ;;  %2636 = vmatprep.mubr.f32.mxu1 %v1805_v25 }
  0x76   : > { %2751 = vmatprep.subr.bf16.mxu1 %v2702_v28  ;;  %2701 = vmatpush3.bf16.msk.msra.mxu0 %vm3282_vm6, %v3001_v27 }
  0x77   : > { %2552 = vmatprep.mubr.f32.mxu0 %v780_v30  ;;  %2703 = vmatprep.subr.bf16.mxu0 %v2702_v28 }
  0x7c   : > { %2637 = vmatmul.mubr.f32.vlgmr.msra.gmra.mrb[0].mxu1 %v1815_v22  ;;  %2553 = vmatmul.mubr.f32.vlgmr.msra.gmra.mrb[0].mxu0 %v790_v32 }
  0x7d   : > { %2753 = vmatpush3.bf16.msra.mxu1 %v2702_v28  ;;  %2643 = vmatprep.mubr.f32.mxu1 %v3241_v60 }
  0x7e   : > { %2755 = vmatprep.subr.bf16.mxu1 %v2706_v15  ;;  %2705 = vmatpush3.bf16.msra.mxu0 %v2702_v28 }
  0x7f   : > { %2559 = vmatprep.mubr.f32.mxu0 %v3248_v0  ;;  %2707 = vmatprep.subr.bf16.mxu0 %v2706_v15 }
  0x84   : > { %2644 = vmatmul.mubr.f32.vlgmr.msra.gmra.mrb[0].mxu1 %v3266_v8  ;;  %2560 = vmatmul.mubr.f32.vlgmr.msra.gmra.mrb[0].mxu0 %v3276_v12 }
  0x85   : > { %2757 = vmatpush3.bf16.msra.mxu1 %v2706_v15  ;;  %2650 = vmatprep.mubr.f32.mxu1 %v3253_v2 }
  0x86   : > { %2759 = vmatprep.subr.msk.bf16.mxu1 %vm3282_vm6, %v3001_v27  ;;  %2709 = vmatpush3.bf16.msra.mxu0 %v2706_v15 }
  0x87   : > { %2566 = vmatprep.mubr.f32.mxu0 %v3263_v6  ;;  %2711 = vmatprep.subr.msk.bf16.mxu0 %vm3282_vm6, %v3001_v27 }
  0x8c   : > { %2651 = vmatmul.mubr.f32.vlgmr.msra.gmra.mrb[0].mxu1 %v1812_v17  ;;  %2567 = vmatmul.mubr.f32.vlgmr.msra.gmra.mrb[0].mxu0 %v787_v23 }
  0x8d   : > { %2761 = vmatpush3.bf16.msk.msra.mxu1 %vm3282_vm6, %v3001_v27  ;;  %2657 = vmatprep.mubr.f32.mxu1 %v1803_v9 }
  0x8e   : > { %2763 = vmatprep.subr.bf16.mxu1 %v2714_v26  ;;  %2713 = vmatpush3.bf16.msk.msra.mxu0 %vm3282_vm6, %v3001_v27 }
  0x8f   : > { %2573 = vmatprep.mubr.f32.mxu0 %v778_v16  ;;  %2715 = vmatprep.subr.bf16.mxu0 %v2714_v26 }
  0x94   : > { %2658 = vmatmul.mubr.f32.vlgmr.msra.gmra.mrb[0].mxu1 %v1813_v24  ;;  %2574 = vmatmul.mubr.f32.vlgmr.msra.gmra.mrb[0].mxu0 %v788_v29 }
  0x95   : > { %2765 = vmatpush3.bf16.msra.mxu1 %v2714_v26  ;;  %2664 = vmatprep.mubr.f32.mxu1 %v3241_v60 }
  0x96   : > { %2767 = vmatprep.subr.msk.bf16.mxu1 %vm3282_vm6, %v3001_v27  ;;  %2717 = vmatpush3.bf16.msra.mxu0 %v2714_v26 }
  0x97   : > { %2580 = vmatprep.mubr.f32.mxu0 %v3248_v0  ;;  %2719 = vmatprep.subr.msk.bf16.mxu0 %vm3282_vm6, %v3001_v27 }
  0x9c   : > { %2665 = vmatmul.mubr.f32.vlgmr.msra.gmra.mrb[0].mxu1 %v3266_v8  ;;  %2581 = vmatmul.mubr.f32.vlgmr.msra.gmra.mrb[0].mxu0 %v3276_v12 }
  0x9d   : > { %2769 = vmatpush3.bf16.msk.msra.mxu1 %vm3282_vm6, %v3001_v27  ;;  %2671 = vmatprep.mubr.f32.mxu1 %v3241_v60 }
  0x9e   : > { %2721 = vmatpush3.bf16.msk.msra.mxu0 %vm3282_vm6, %v3001_v27  ;;  %2587 = vmatprep.mubr.f32.mxu0 %v3248_v0 }
  0xa4   : > { %2672 = vmatmul.mubr.f32.vlgmr.msra.gmra.mrb[0].mxu1 %v3266_v8  ;;  %2588 = vmatmul.mubr.f32.vlgmr.msra.gmra.mrb[0].mxu0 %v3276_v12 }
 0x177   : > { %v2673_v33 = vpop.f32.mrb[0].mxu1  ;;  %v2589_v35 = vpop.f32.mrb[0].mxu0 }
 0x178   : > { %v2226_v34 = vpop.f32.mrb[1].mxu1  ;;  %1213 = vst.msk [vmem:[%s165_s29 + $0x8] sm:$0xff] %vm1211_vm7, %v2589_v35  ;;  %v1201_v36 = vpop.f32.mrb[1].mxu0 }
 0x179   : > { %2238 = vrot.lane.b32.xlu0 %v2226_v34, %s3002_s27  ;;  %1212 = vst.msk [vmem:[%s165_s29] sm:$0xff] %vm1211_vm7, %v1201_v36 }
 0x17d   : > { %2240 = vrot.lane.b32.xlu0 %v2673_v33, %s3002_s27 }
 0x1eb   : > { %v2239_v27 = vpop.permute.xlu0 %2238 }
 0x1ec   : > { %2245 = vst.msk [vmem:[%s165_s29] sm:$0xff] %vm2244_vm8, %v2239_v27 }
 0x1ef   : > { %v2241_v37 = vpop.permute.xlu0 %2240 }
 0x1f0   : > { %2246 = vst.msk [vmem:[%s165_s29 + $0x8] sm:$0xff] %vm2244_vm8, %v2241_v37 }
 0x1f1   : > { %2926 = shalt.err (!%p2923_p5)
}
 0x1f2   : > { %s2927_s23 = scalar_lea.hbm %s3362_s13, 256  ;;  %s2931_s28 = scalar_lea.hbm %s3414_s1, 512 }
 0x1f3   : > { %p2928_p4 = scmp.ne.s32.totalorder %s3362_s13, %s2927_s23  ;;  %p2932_p12 = scmp.lt.u32.totalorder %s3362_s13, %s3414_s1 }
 0x1f4   : > { %p2933_p1 = scmp.lt.u32.totalorder %s2931_s28, %s2927_s23  ;;  %p2935_p8 = scmp.lt.u32.totalorder %s2927_s23, %s3362_s13 }
 0x1f5   : > { %p2929_p7 = pnand %p2928_p4, %p3430_p9 }
 0x1f6   : > { %p2934_p3 = por %p2933_p1, %p2932_p12 }
 0x1f7   : > { %p2930_p10 = pneg %p2929_p7 }
 0x1f8   : > { %p2936_p11 = por %p2935_p8, %p2934_p3 }
 0x1fa   : > { %p2937_p0 = pnand %p2936_p11, %p2930_p10 }
 0x1fc   : > { %2940 = shalt.err (!%p2937_p0)
}
 0x1fd   : > { %s3004_s18 = smov 128   ;;  %s3005_s27 = smov 8  }
 0x1fe   : > { %2816 = dma.vmem_to_hbm [thread:$0]  (%p3430_p9), %s3364_s2, 256, %s3362_s13, %s2248_s15, %s3004_s18, %s3004_s18, %s3005_s27  }
 0x1ff PF: > { %s2280_s29 = sand.u32 1, %s2975_s6   ;;  %p3431_p6 = scmp.ne.s32.totalorder %s3419_s21, 0 }
 0x200   : > { %p3432_p13 = scmp.ge.s32.totalorder %s2995_s11, 2  ;;  %s2281_s30 = scalar_lea.sflag [#allocation4], %s2280_s29 }
 0x202   : > { %p2823_p2 = pnand %p3432_p13, %p3431_p6 }
 0x204   : > { %2970 = dma.done.wait (!%p2823_p2), %s2281_s30, 256  }
 0x205   : > { %2972 = vsyncadd (!%p2823_p2), %s2281_s30, 4294967040  ;;  %s17_s11 = sadd.s32 1, %s2995_s11   ;;  %s3433_s6 = smov %s2979_s7 }
 0x206   : > { %p14_p5 = scmp.ge.s32.totalorder %s17_s11, 4   ;;  %s3434_s7 = smov %s2983_s8 }
 0x207   : > { %s3435_s8 = smov %s3072_s20  ;;  %s3436_s9 = smov %s2991_s10 }
 0x208   : > { %s3437_s10 = smov %s3439_s14  ;;  %16 = sbr.rel (!%p14_p5) target bundleno = 6 (0x6), region = 72 }
 0x20f   :  { %2286 = vsyncpa [#allocation3], 1 }
 0x210   :  { %2288 = vsyncpa [#allocation3 + $0x1], 1 }
 0x211   :  { %2289 = vsyncpa [#allocation4], 1 }
 0x212   :  { %2291 = vsyncpa [#allocation4 + $0x1], 1 }

</bundles_post_ra>
